<compile_context>
chip_gen: v5e
topology: v5e:2x2
jax: 0.10.0
libtpu: 0.0.40
codegen_flags: <defaults>
</compile_context>

<pallas_src>
import jax
import jax.numpy as jnp
from jax.experimental import pallas as pl
from jax.experimental.pallas import tpu as pltpu

_LANE = 128


def pa_kernel(w_ref, b_ref, x_ref, o_ref):
    """One (1, C, R, 128) tile: out[co] = x[co] * sigmoid(b[co] + sum_ci w[co,ci]*x[ci]).

    w_ref : (C, C) SMEM  conv1x1 weight, [c_out, c_in]
    b_ref : (C,)   SMEM  bias
    x_ref / o_ref : (1, C, R, 128) VMEM  dense spatial slabs per channel
    """
    c = x_ref.shape[1]
    # Load each input channel slab once (widen to f32 for v5e-safe VPU/EUP math).
    xs = [x_ref[0, ci].astype(jnp.float32) for ci in range(c)]   # each (R, 128)
    for co in range(c):
        acc = xs[0] * w_ref[co, 0] + b_ref[co]        # scalar-splat FMAs (VPU only)
        for ci in range(1, c):
            acc = acc + xs[ci] * w_ref[co, ci]
        y = jax.nn.sigmoid(acc)                       # EUP
        o_ref[0, co] = (xs[co] * y).astype(o_ref.dtype)   # full-width lane-dense store


def _max_block_bytes():
    # v7x (3.2 TB/s HBM, 32 MiB scoped VMEM): 4 MiB blocks to amortize per-step
    # overhead.  v5e/v6e: 2 MiB is already >=2.5us of HBM traffic per step and
    # keeps 4 double-buffered blocks well under v5e's 16 MiB scoped default.
    try:
        kind = jax.devices()[0].device_kind.lower()
    except Exception:
        kind = ""
    return (4 << 20) if "v7" in kind else (2 << 20)


def _row_tile(r_total, c, itemsize, n_batch):
    """Rows (sublane groups of 128 lanes) per block."""
    def cdiv(a, b):
        return -(-a // b)

    bytes_per_row = c * _LANE * itemsize
    max_rows = max(8, (_max_block_bytes() // bytes_per_row) // 8 * 8)

    # Keep >= ~8 total grid steps so the BlockSpec double-buffer pipeline
    # actually overlaps prefetch/writeback (and both v7x TCs get several steps).
    steps_per_batch = max(1, cdiv(8, max(n_batch, 1)))
    rows_for_steps = max(8, cdiv(cdiv(r_total, steps_per_batch), 8) * 8)

    rt = min(max_rows, rows_for_steps)
    if r_total <= rt:
        return r_total          # full extent: bypasses the (8,128) divisibility rule
    return rt                   # multiple of 8, lane dim always full 128


@jax.jit
def pa_forward(x_nchw, weight, bias):
    """Pixel attention forward.

    x_nchw : (N, C, H, W)
    weight : (C, C) or (C, C, 1, 1)  conv1x1 weight, PyTorch (c_out, c_in) layout
    bias   : (C,)
    """
    N, C, H, W = x_nchw.shape
    HW = H * W
    hw_pad = ((HW + _LANE - 1) // _LANE) * _LANE

    x3 = x_nchw.reshape(N, C, HW)
    if hw_pad != HW:
        # Pad spatial once so all tiles are lane-dense (no masked vst.msk edge tiles).
        x3 = jnp.pad(x3, ((0, 0), (0, 0), (0, hw_pad - HW)))
    r_total = hw_pad // _LANE
    x4 = x3.reshape(N, C, r_total, _LANE)            # pure view when HW % 128 == 0

    w = weight.reshape(C, C).astype(jnp.float32)
    b = bias.reshape(C).astype(jnp.float32)

    itemsize = jnp.dtype(x_nchw.dtype).itemsize
    r_tile = _row_tile(r_total, C, itemsize, N)
    grid = (N, pl.cdiv(r_total, r_tile))

    out4 = pl.pallas_call(
        pa_kernel,
        out_shape=jax.ShapeDtypeStruct((N, C, r_total, _LANE), x_nchw.dtype),
        grid=grid,
        in_specs=[
            pl.BlockSpec(memory_space=pltpu.MemorySpace.SMEM),   # weight (scalars)
            pl.BlockSpec(memory_space=pltpu.MemorySpace.SMEM),   # bias   (scalars)
            pl.BlockSpec((1, C, r_tile, _LANE), lambda n, s: (n, 0, s, 0)),
        ],
        out_specs=pl.BlockSpec((1, C, r_tile, _LANE), lambda n, s: (n, 0, s, 0)),
        compiler_params=pltpu.CompilerParams(
            dimension_semantics=("parallel", "parallel"),
            vmem_limit_bytes=32 << 20,
        ),
    )(w, b, x4)

    out3 = out4.reshape(N, C, hw_pad)
    if hw_pad != HW:
        out3 = out3[:, :, :HW]
    return out3.reshape(N, C, H, W)


def pa_reference(x_nchw, weight, bias):
    # pure-JAX reference of the PyTorch forward (1x1 conv == channel matmul)
    y = jnp.einsum('oi,nihw->nohw', weight, x_nchw) + bias[None, :, None, None]
    return x_nchw * jax.nn.sigmoid(y)


if __name__ == "__main__":
    key = jax.random.PRNGKey(0)
    k_x, k_w, k_b = jax.random.split(key, 3)

    N, C, H, W = 2, 4, 16, 16     # nf = 4

    x = jax.random.normal(k_x, (N, C, H, W), dtype=jnp.float32)
    # deterministic "conv" params: nn.Conv2d(nf, nf, 1) -> weight (nf, nf, 1, 1), bias (nf,)
    bound = 1.0 / (C ** 0.5)
    weight = jax.random.uniform(k_w, (C, C), minval=-bound, maxval=bound,
                                dtype=jnp.float32)
    bias = jax.random.uniform(k_b, (C,), minval=-bound, maxval=bound,
                              dtype=jnp.float32)

    out = pa_forward(x, weight, bias)
    jax.block_until_ready(out)

    ref = pa_reference(x, weight, bias)
    assert out.shape == (N, C, H, W)
    assert jnp.allclose(out, ref, atol=1e-5, rtol=1e-5), "mismatch vs reference"

    print("KERNEL_OK")
</pallas_src>

<mosaic_0001>
module attributes {stable_mosaic.version = 11 : i64} {
  func.func @pa_kernel(%arg0: i32, %arg1: i32, %arg2: memref<4x4xf32, #tpu.memory_space<smem>>, %arg3: memref<4xf32, #tpu.memory_space<smem>>, %arg4: memref<1x4x2x128xf32, #tpu.memory_space<vmem>>, %arg5: memref<1x4x2x128xf32, #tpu.memory_space<vmem>>) attributes {dimension_semantics = [#tpu.dimension_semantics<parallel>, #tpu.dimension_semantics<parallel>], iteration_bounds = array<i64: 2, 1>, scalar_prefetch = 0 : i64, scratch_operands = 0 : i64, tpu.core_type = #tpu.core_type<tc>, window_params = [{transform_indices = @transform_0, window_bounds = array<i64: 4, 4>}, {transform_indices = @transform_1, window_bounds = array<i64: 4>}, {transform_indices = @transform_2, window_bounds = array<i64: 1, 4, 2, 128>}, {transform_indices = @transform_3, window_bounds = array<i64: 1, 4, 2, 128>}]} {
    %c0 = arith.constant 0 : index
    %c0_0 = arith.constant 0 : index
    %c0_1 = arith.constant 0 : index
    %c0_2 = arith.constant 0 : index
    %0 = vector.load %arg4[%c0, %c0_0, %c0_1, %c0_2] : memref<1x4x2x128xf32, #tpu.memory_space<vmem>>, vector<1x1x2x128xf32>
    %1 = vector.shape_cast %0 : vector<1x1x2x128xf32> to vector<2x128xf32>
    %c0_3 = arith.constant 0 : index
    %c1 = arith.constant 1 : index
    %c0_4 = arith.constant 0 : index
    %c0_5 = arith.constant 0 : index
    %2 = vector.load %arg4[%c0_3, %c1, %c0_4, %c0_5] : memref<1x4x2x128xf32, #tpu.memory_space<vmem>>, vector<1x1x2x128xf32>
    %3 = vector.shape_cast %2 : vector<1x1x2x128xf32> to vector<2x128xf32>
    %c0_6 = arith.constant 0 : index
    %c2 = arith.constant 2 : index
    %c0_7 = arith.constant 0 : index
    %c0_8 = arith.constant 0 : index
    %4 = vector.load %arg4[%c0_6, %c2, %c0_7, %c0_8] : memref<1x4x2x128xf32, #tpu.memory_space<vmem>>, vector<1x1x2x128xf32>
    %5 = vector.shape_cast %4 : vector<1x1x2x128xf32> to vector<2x128xf32>
    %c0_9 = arith.constant 0 : index
    %c3 = arith.constant 3 : index
    %c0_10 = arith.constant 0 : index
    %c0_11 = arith.constant 0 : index
    %6 = vector.load %arg4[%c0_9, %c3, %c0_10, %c0_11] : memref<1x4x2x128xf32, #tpu.memory_space<vmem>>, vector<1x1x2x128xf32>
    %7 = vector.shape_cast %6 : vector<1x1x2x128xf32> to vector<2x128xf32>
    %c0_12 = arith.constant 0 : index
    %c0_13 = arith.constant 0 : index
    %8 = memref.load %arg2[%c0_12, %c0_13] : memref<4x4xf32, #tpu.memory_space<smem>>
    %9 = vector.broadcast %8 : f32 to vector<2x128xf32>
    %10 = arith.mulf %1, %9 : vector<2x128xf32>
    %c0_14 = arith.constant 0 : index
    %11 = memref.load %arg3[%c0_14] : memref<4xf32, #tpu.memory_space<smem>>
    %12 = vector.broadcast %11 : f32 to vector<2x128xf32>
    %13 = arith.addf %10, %12 : vector<2x128xf32>
    %c0_15 = arith.constant 0 : index
    %c1_16 = arith.constant 1 : index
    %14 = memref.load %arg2[%c0_15, %c1_16] : memref<4x4xf32, #tpu.memory_space<smem>>
    %15 = vector.broadcast %14 : f32 to vector<2x128xf32>
    %16 = arith.mulf %3, %15 : vector<2x128xf32>
    %17 = arith.addf %13, %16 : vector<2x128xf32>
    %c0_17 = arith.constant 0 : index
    %c2_18 = arith.constant 2 : index
    %18 = memref.load %arg2[%c0_17, %c2_18] : memref<4x4xf32, #tpu.memory_space<smem>>
    %19 = vector.broadcast %18 : f32 to vector<2x128xf32>
    %20 = arith.mulf %5, %19 : vector<2x128xf32>
    %21 = arith.addf %17, %20 : vector<2x128xf32>
    %c0_19 = arith.constant 0 : index
    %c3_20 = arith.constant 3 : index
    %22 = memref.load %arg2[%c0_19, %c3_20] : memref<4x4xf32, #tpu.memory_space<smem>>
    %23 = vector.broadcast %22 : f32 to vector<2x128xf32>
    %24 = arith.mulf %7, %23 : vector<2x128xf32>
    %25 = arith.addf %21, %24 : vector<2x128xf32>
    %26 = arith.negf %25 : vector<2x128xf32>
    %27 = math.exp %26 : vector<2x128xf32>
    %cst = arith.constant 1.000000e+00 : f32
    %28 = vector.broadcast %cst : f32 to vector<2x128xf32>
    %29 = arith.addf %28, %27 : vector<2x128xf32>
    %30 = arith.divf %28, %29 : vector<2x128xf32>
    %31 = arith.mulf %1, %30 : vector<2x128xf32>
    %c0_21 = arith.constant 0 : index
    %c0_22 = arith.constant 0 : index
    %c0_23 = arith.constant 0 : index
    %c0_24 = arith.constant 0 : index
    %32 = vector.load %arg5[%c0_21, %c0_22, %c0_23, %c0_24] : memref<1x4x2x128xf32, #tpu.memory_space<vmem>>, vector<1x1x2x128xf32>
    %33 = vector.shape_cast %32 : vector<1x1x2x128xf32> to vector<2x128xf32>
    %34 = vector.shape_cast %31 : vector<2x128xf32> to vector<1x1x2x128xf32>
    tpu.vector_store %arg5[%c0_21, %c0_22, %c0_23, %c0_24], %34 {strides = array<i32>} : memref<1x4x2x128xf32, #tpu.memory_space<vmem>>, vector<1x1x2x128xf32>,
    %c1_25 = arith.constant 1 : index
    %c0_26 = arith.constant 0 : index
    %35 = memref.load %arg2[%c1_25, %c0_26] : memref<4x4xf32, #tpu.memory_space<smem>>
    %36 = vector.broadcast %35 : f32 to vector<2x128xf32>
    %37 = arith.mulf %1, %36 : vector<2x128xf32>
    %c1_27 = arith.constant 1 : index
    %38 = memref.load %arg3[%c1_27] : memref<4xf32, #tpu.memory_space<smem>>
    %39 = vector.broadcast %38 : f32 to vector<2x128xf32>
    %40 = arith.addf %37, %39 : vector<2x128xf32>
    %c1_28 = arith.constant 1 : index
    %c1_29 = arith.constant 1 : index
    %41 = memref.load %arg2[%c1_28, %c1_29] : memref<4x4xf32, #tpu.memory_space<smem>>
    %42 = vector.broadcast %41 : f32 to vector<2x128xf32>
    %43 = arith.mulf %3, %42 : vector<2x128xf32>
    %44 = arith.addf %40, %43 : vector<2x128xf32>
    %c1_30 = arith.constant 1 : index
    %c2_31 = arith.constant 2 : index
    %45 = memref.load %arg2[%c1_30, %c2_31] : memref<4x4xf32, #tpu.memory_space<smem>>
    %46 = vector.broadcast %45 : f32 to vector<2x128xf32>
    %47 = arith.mulf %5, %46 : vector<2x128xf32>
    %48 = arith.addf %44, %47 : vector<2x128xf32>
    %c1_32 = arith.constant 1 : index
    %c3_33 = arith.constant 3 : index
    %49 = memref.load %arg2[%c1_32, %c3_33] : memref<4x4xf32, #tpu.memory_space<smem>>
    %50 = vector.broadcast %49 : f32 to vector<2x128xf32>
    %51 = arith.mulf %7, %50 : vector<2x128xf32>
    %52 = arith.addf %48, %51 : vector<2x128xf32>
    %53 = arith.negf %52 : vector<2x128xf32>
    %54 = math.exp %53 : vector<2x128xf32>
    %cst_34 = arith.constant 1.000000e+00 : f32
    %55 = vector.broadcast %cst_34 : f32 to vector<2x128xf32>
    %56 = arith.addf %55, %54 : vector<2x128xf32>
    %57 = arith.divf %55, %56 : vector<2x128xf32>
    %58 = arith.mulf %3, %57 : vector<2x128xf32>
    %c0_35 = arith.constant 0 : index
    %c1_36 = arith.constant 1 : index
    %c0_37 = arith.constant 0 : index
    %c0_38 = arith.constant 0 : index
    %59 = vector.load %arg5[%c0_35, %c1_36, %c0_37, %c0_38] : memref<1x4x2x128xf32, #tpu.memory_space<vmem>>, vector<1x1x2x128xf32>
    %60 = vector.shape_cast %59 : vector<1x1x2x128xf32> to vector<2x128xf32>
    %61 = vector.shape_cast %58 : vector<2x128xf32> to vector<1x1x2x128xf32>
    tpu.vector_store %arg5[%c0_35, %c1_36, %c0_37, %c0_38], %61 {strides = array<i32>} : memref<1x4x2x128xf32, #tpu.memory_space<vmem>>, vector<1x1x2x128xf32>,
    %c2_39 = arith.constant 2 : index
    %c0_40 = arith.constant 0 : index
    %62 = memref.load %arg2[%c2_39, %c0_40] : memref<4x4xf32, #tpu.memory_space<smem>>
    %63 = vector.broadcast %62 : f32 to vector<2x128xf32>
    %64 = arith.mulf %1, %63 : vector<2x128xf32>
    %c2_41 = arith.constant 2 : index
    %65 = memref.load %arg3[%c2_41] : memref<4xf32, #tpu.memory_space<smem>>
    %66 = vector.broadcast %65 : f32 to vector<2x128xf32>
    %67 = arith.addf %64, %66 : vector<2x128xf32>
    %c2_42 = arith.constant 2 : index
    %c1_43 = arith.constant 1 : index
    %68 = memref.load %arg2[%c2_42, %c1_43] : memref<4x4xf32, #tpu.memory_space<smem>>
    %69 = vector.broadcast %68 : f32 to vector<2x128xf32>
    %70 = arith.mulf %3, %69 : vector<2x128xf32>
    %71 = arith.addf %67, %70 : vector<2x128xf32>
    %c2_44 = arith.constant 2 : index
    %c2_45 = arith.constant 2 : index
    %72 = memref.load %arg2[%c2_44, %c2_45] : memref<4x4xf32, #tpu.memory_space<smem>>
    %73 = vector.broadcast %72 : f32 to vector<2x128xf32>
    %74 = arith.mulf %5, %73 : vector<2x128xf32>
    %75 = arith.addf %71, %74 : vector<2x128xf32>
    %c2_46 = arith.constant 2 : index
    %c3_47 = arith.constant 3 : index
    %76 = memref.load %arg2[%c2_46, %c3_47] : memref<4x4xf32, #tpu.memory_space<smem>>
    %77 = vector.broadcast %76 : f32 to vector<2x128xf32>
    %78 = arith.mulf %7, %77 : vector<2x128xf32>
    %79 = arith.addf %75, %78 : vector<2x128xf32>
    %80 = arith.negf %79 : vector<2x128xf32>
    %81 = math.exp %80 : vector<2x128xf32>
    %cst_48 = arith.constant 1.000000e+00 : f32
    %82 = vector.broadcast %cst_48 : f32 to vector<2x128xf32>
    %83 = arith.addf %82, %81 : vector<2x128xf32>
    %84 = arith.divf %82, %83 : vector<2x128xf32>
    %85 = arith.mulf %5, %84 : vector<2x128xf32>
    %c0_49 = arith.constant 0 : index
    %c2_50 = arith.constant 2 : index
    %c0_51 = arith.constant 0 : index
    %c0_52 = arith.constant 0 : index
    %86 = vector.load %arg5[%c0_49, %c2_50, %c0_51, %c0_52] : memref<1x4x2x128xf32, #tpu.memory_space<vmem>>, vector<1x1x2x128xf32>
    %87 = vector.shape_cast %86 : vector<1x1x2x128xf32> to vector<2x128xf32>
    %88 = vector.shape_cast %85 : vector<2x128xf32> to vector<1x1x2x128xf32>
    tpu.vector_store %arg5[%c0_49, %c2_50, %c0_51, %c0_52], %88 {strides = array<i32>} : memref<1x4x2x128xf32, #tpu.memory_space<vmem>>, vector<1x1x2x128xf32>,
    %c3_53 = arith.constant 3 : index
    %c0_54 = arith.constant 0 : index
    %89 = memref.load %arg2[%c3_53, %c0_54] : memref<4x4xf32, #tpu.memory_space<smem>>
    %90 = vector.broadcast %89 : f32 to vector<2x128xf32>
    %91 = arith.mulf %1, %90 : vector<2x128xf32>
    %c3_55 = arith.constant 3 : index
    %92 = memref.load %arg3[%c3_55] : memref<4xf32, #tpu.memory_space<smem>>
    %93 = vector.broadcast %92 : f32 to vector<2x128xf32>
    %94 = arith.addf %91, %93 : vector<2x128xf32>
    %c3_56 = arith.constant 3 : index
    %c1_57 = arith.constant 1 : index
    %95 = memref.load %arg2[%c3_56, %c1_57] : memref<4x4xf32, #tpu.memory_space<smem>>
    %96 = vector.broadcast %95 : f32 to vector<2x128xf32>
    %97 = arith.mulf %3, %96 : vector<2x128xf32>
    %98 = arith.addf %94, %97 : vector<2x128xf32>
    %c3_58 = arith.constant 3 : index
    %c2_59 = arith.constant 2 : index
    %99 = memref.load %arg2[%c3_58, %c2_59] : memref<4x4xf32, #tpu.memory_space<smem>>
    %100 = vector.broadcast %99 : f32 to vector<2x128xf32>
    %101 = arith.mulf %5, %100 : vector<2x128xf32>
    %102 = arith.addf %98, %101 : vector<2x128xf32>
    %c3_60 = arith.constant 3 : index
    %c3_61 = arith.constant 3 : index
    %103 = memref.load %arg2[%c3_60, %c3_61] : memref<4x4xf32, #tpu.memory_space<smem>>
    %104 = vector.broadcast %103 : f32 to vector<2x128xf32>
    %105 = arith.mulf %7, %104 : vector<2x128xf32>
    %106 = arith.addf %102, %105 : vector<2x128xf32>
    %107 = arith.negf %106 : vector<2x128xf32>
    %108 = math.exp %107 : vector<2x128xf32>
    %cst_62 = arith.constant 1.000000e+00 : f32
    %109 = vector.broadcast %cst_62 : f32 to vector<2x128xf32>
    %110 = arith.addf %109, %108 : vector<2x128xf32>
    %111 = arith.divf %109, %110 : vector<2x128xf32>
    %112 = arith.mulf %7, %111 : vector<2x128xf32>
    %c0_63 = arith.constant 0 : index
    %c3_64 = arith.constant 3 : index
    %c0_65 = arith.constant 0 : index
    %c0_66 = arith.constant 0 : index
    %113 = vector.load %arg5[%c0_63, %c3_64, %c0_65, %c0_66] : memref<1x4x2x128xf32, #tpu.memory_space<vmem>>, vector<1x1x2x128xf32>
    %114 = vector.shape_cast %113 : vector<1x1x2x128xf32> to vector<2x128xf32>
    %115 = vector.shape_cast %112 : vector<2x128xf32> to vector<1x1x2x128xf32>
    tpu.vector_store %arg5[%c0_63, %c3_64, %c0_65, %c0_66], %115 {strides = array<i32>} : memref<1x4x2x128xf32, #tpu.memory_space<vmem>>, vector<1x1x2x128xf32>,
    return
  }
  func.func @transform_0(%arg0: i32, %arg1: i32) -> (i32, i32) {
    %c0_i32 = arith.constant 0 : i32
    %c0_i32_0 = arith.constant 0 : i32
    %c0_i32_1 = arith.constant 0 : i32
    return %c0_i32, %c0_i32_0 : i32, i32
  }
  func.func @transform_1(%arg0: i32, %arg1: i32) -> i32 {
    %c0_i32 = arith.constant 0 : i32
    %c0_i32_0 = arith.constant 0 : i32
    return %c0_i32 : i32
  }
  func.func @transform_2(%arg0: i32, %arg1: i32) -> (i32, i32, i32, i32) {
    %c0_i32 = arith.constant 0 : i32
    %c0_i32_0 = arith.constant 0 : i32
    %c0_i32_1 = arith.constant 0 : i32
    return %arg0, %c0_i32, %arg1, %c0_i32_0 : i32, i32, i32, i32
  }
  func.func @transform_3(%arg0: i32, %arg1: i32) -> (i32, i32, i32, i32) {
    %c0_i32 = arith.constant 0 : i32
    %c0_i32_0 = arith.constant 0 : i32
    %c0_i32_1 = arith.constant 0 : i32
    return %arg0, %c0_i32, %arg1, %c0_i32_0 : i32, i32, i32, i32
  }
}

</mosaic_0001>

<bundles_post_ra>
// kernel: pa_forward.1
= control target key start
LH: loop header
LB: loop body
LE: loop exit
PB: predicated region body
PF: predicated region fallthrough
CT: control target
= control target key end

     0   :  { %8 = vsyncpa [#allocation3], 0  ;;  %s790_s0 = inlined_call_operand.vmem [shape: f32[4,4], index: 0, kind: input, shape index: {}]   ;;  %s791_s1 = inlined_call_operand.vmem [shape: f32[4], index: 1, kind: input, shape index: {}]   ;;  %s792_s2 = inlined_call_operand.vmem [shape: f32[2,4,2,128], index: 2, kind: input, shape index: {}]   ;;  %s793_s3 = inlined_call_operand.vmem [shape: f32[2,4,2,128], index: 3, kind: output, shape index: {}]  }
   0x1   :  { %9 = vsyncpa [#allocation5], 0  ;;  %s691_s12 = smov 0   ;;  %s693_s13 = smov 0  }
   0x2   :  { %s695_s14 = smov 0  }
   0x3 LB: > { %s501_s15 = sadd.s32 4294967295, %s667_s14   ;;  %s27_s16 = sadd.s32 1, %s663_s13  ;;  %s667_s14 = sphi %s695_s14, %s15_s14   ;;  %s663_s13 = sphi %s693_s13, %s796_s13   ;;  %s659_s12 = sphi %s691_s12, %s795_s12  }
   0x4   : > { %p29_p0 = scmp.ge.s32.totalorder %s27_s16, 2  ;;  %p503_p1 = scmp.ge.s32.totalorder %s667_s14, 1 }
   0x5   : > { %p130_p2 = scmp.lt.s32.totalorder %s667_s14, 3  ;;  %p712_p4 = scmp.eq.s32.totalorder %s501_s15, 0 }
   0x6   : > { %s798_s16 = smov (%p29_p0, %s27_s16), 0  ;;  %s142_s20 = sshll.u32 %s790_s0, 4  ;;  %s143_s20 = int_to_ptr.vmem [resolvable:$true] %s142_s20 }
   0x7   : > { %p131_p3 = pnand %p503_p1, %p130_p2  ;;  %s152_s23 = sshll.u32 %s791_s1, 4  ;;  %s153_s23 = int_to_ptr.vmem [resolvable:$true] %s152_s23 }
   0x8   : > { %s669_s24 = smov [#allocation2]   ;;  %s670_s25 = smov [#allocation4]  }
   0x9   : > { %p554_p5 = pneg %p131_p3 }
   0xa   : > { %176 = sbr.rel (%p131_p3) target bundleno = 84 (0x54), region = 32 }
   0xb   : > { %p555_p6 = pnand %p712_p4, %p554_p5 }
   0xd   : > { %557 = dma.vmem_to_smem (!%p555_p6), %s143_s20, 64, %s669_s24, [#allocation3]  }
   0xe   : > { %560 = dma.vmem_to_smem (!%p555_p6), %s153_s23, 16, %s670_s25, [#allocation5]  }
   0xf   : > { %650 = dma.done.wait (%p712_p4), [#allocation3], 64  }
  0x10   : > { %652 = vsyncadd (%p712_p4), [#allocation3], 4294967232 }
  0x11   : > { %654 = dma.done.wait (%p712_p4), [#allocation5], 16  }
  0x12   : > { %656 = vsyncadd (%p712_p4), [#allocation5], 4294967280 }
  0x13   : > { %188 = sfence }
  0x14   : > { %p213_p7 = scmp.lt.s32.totalorder %s659_s12, 1  ;;  %s236_s26 = sld [smem:[#allocation2]] }
  0x15   : > { %s239_s27 = sld [smem:[#allocation4]] }
  0x16   : > { %s800_s12 = smov (!%p213_p7, %s659_s12), 1  ;;  %s517_s28 = sld [smem:[#allocation2 + $0x1]] }
  0x17   : > { %s544_s29 = sshll.u32 %s800_s12, 3  ;;  %s518_s30 = sld [smem:[#allocation2 + $0x2]] }
  0x18   : > { %s220_s6 = scalar_lea.vmem %s792_s2, %s544_s29  ;;  %s519_s7 = sld [smem:[#allocation2 + $0x3]] }
  0x19   : > { %v742_v0 = vld [vmem:[%s220_s6] sm:$0x3]  ;;  %v744_v2 = vld [vmem:[%s220_s6 + $0x2] sm:$0x3]  ;;  %v747_v5 = vld [vmem:[%s220_s6 + $0x4] sm:$0x3] }
  0x1a   : > { %v237_v1 = vstv %s236_s26  ;;  %s521_s8 = sld [smem:[#allocation2 + $0x80]]  ;;  %v750_v10 = vld [vmem:[%s220_s6 + $0x6] sm:$0x3] }
  0x1b   : > { %v238_v3 = vmul.f32 %v237_v1, %v742_v0  ;;  %v240_v4 = vstv %s239_s27  ;;  %s522_s9 = sld [smem:[#allocation4 + $0x1]] }
  0x1c   : > { %v243_v7 = vstv %s517_s28  ;;  %s523_s10 = sld [smem:[#allocation2 + $0x81]] }
  0x1d   : > { %v241_v6 = vadd.f32 %v240_v4, %v238_v3  ;;  %v244_v8 = vmul.f32 %v744_v2, %v243_v7  ;;  %v247_v9 = vstv %s518_s30  ;;  %s524_s11 = sld [smem:[#allocation2 + $0x82]]  ;;  %s771_s30 = scalar_lea.vmem %s793_s3, %s544_s29 }
  0x1e   : > { %v248_v11 = vmul.f32 %v747_v5, %v247_v9  ;;  %s525_s15 = sld [smem:[#allocation2 + $0x83]]  ;;  %v251_v13 = vstv %s519_s7 }
  0x1f   : > { %v245_v12 = vadd.f32 %v244_v8, %v241_v6  ;;  %s528_s17 = sld [smem:[#allocation2 + $0x100]]  ;;  %v252_v15 = vmul.f32 %v750_v10, %v251_v13 }
  0x20   : > { %v276_v16 = vstv %s521_s8  ;;  %s529_s18 = sld [smem:[#allocation4 + $0x2]] }
  0x21   : > { %v249_v14 = vadd.f32 %v248_v11, %v245_v12  ;;  %v277_v17 = vmul.f32 %v276_v16, %v742_v0  ;;  %v279_v18 = vstv %s522_s9  ;;  %s530_s19 = sld [smem:[#allocation2 + $0x101]] }
  0x22   : > { %v282_v20 = vstv %s523_s10  ;;  %s531_s20 = sld [smem:[#allocation2 + $0x102]] }
  0x23   : > { %v253_v19 = vadd.f32 %v252_v15, %v249_v14  ;;  %v280_v21 = vadd.f32 %v279_v18, %v277_v17  ;;  %v283_v22 = vmul.f32 %v744_v2, %v282_v20  ;;  %v286_v23 = vstv %s524_s11  ;;  %s532_s21 = sld [smem:[#allocation2 + $0x103]] }
  0x24   : > { %v287_v25 = vmul.f32 %v747_v5, %v286_v23  ;;  %v290_v26 = vstv %s525_s15  ;;  %s535_s22 = sld [smem:[#allocation2 + $0x180]] }
  0x25   : > { %v520_v24 = vmul.f32 -1.442695, %v253_v19  ;;  %v284_v27 = vadd.f32 %v283_v22, %v280_v21  ;;  %v291_v28 = vmul.f32 %v750_v10, %v290_v26  ;;  %v316_v29 = vstv %s528_s17  ;;  %s536_s23 = sld [smem:[#allocation4 + $0x3]] }
  0x26   : > { %v317_v30 = vmul.f32 %v316_v29, %v742_v0  ;;  %v319_v31 = vstv %s529_s18  ;;  %s537_s24 = sld [smem:[#allocation2 + $0x181]] }
  0x27   : > { %591 = vpow2.f32 %v520_v24  ;;  %v288_v32 = vadd.f32 %v287_v25, %v284_v27  ;;  %v322_v33 = vstv %s530_s19  ;;  %s538_s25 = sld [smem:[#allocation2 + $0x182]] }
  0x28   : > { %v320_v34 = vadd.f32 %v319_v31, %v317_v30  ;;  %v323_v35 = vmul.f32 %v744_v2, %v322_v33  ;;  %v326_v36 = vstv %s531_s20  ;;  %s539_s26 = sld [smem:[#allocation2 + $0x183]] }
  0x29   : > { %v292_v37 = vadd.f32 %v291_v28, %v288_v32  ;;  %v327_v38 = vmul.f32 %v747_v5, %v326_v36  ;;  %v330_v39 = vstv %s532_s21 }
  0x2a   : > { %v324_v40 = vadd.f32 %v323_v35, %v320_v34  ;;  %v331_v41 = vmul.f32 %v750_v10, %v330_v39  ;;  %v356_v42 = vstv %s535_s22 }
  0x2b   : > { %v526_v43 = vmul.f32 -1.442695, %v292_v37  ;;  %v357_v44 = vmul.f32 %v356_v42, %v742_v0  ;;  %v359_v45 = vstv %s536_s23 }
  0x2c   : > { %v328_v47 = vadd.f32 %v327_v38, %v324_v40  ;;  %v362_v48 = vstv %s537_s24 }
  0x2d   : > { %v592_v46 = vpop.eup %591  ;;  %593 = vpow2.f32 %v526_v43  ;;  %v360_v50 = vadd.f32 %v359_v45, %v357_v44  ;;  %v363_v51 = vmul.f32 %v744_v2, %v362_v48  ;;  %v366_v53 = vstv %s538_s25 }
  0x2e   : > { %v257_v49 = vadd.f32 1.0, %v592_v46  ;;  %v332_v52 = vadd.f32 %v331_v41, %v328_v47  ;;  %v370_v54 = vstv %s539_s26  ;;  %v367_v57 = vmul.f32 %v747_v5, %v366_v53 }
  0x2f   : > { %v364_v56 = vadd.f32 %v363_v51, %v360_v50  ;;  %v371_v58 = vmul.f32 %v750_v10, %v370_v54 }
  0x30   : > { %595 = vrcp.f32 %v257_v49  ;;  %v533_v55 = vmul.f32 -1.442695, %v332_v52  ;;  %vm263_vm0 = vweird.f32 %v257_v49  ;;  %v269_v4 = vand.u32 2147483648, %v257_v49 }
  0x31   : > { %v368_v59 = vadd.f32 %v367_v57, %v364_v56  ;;  %v267_v8 = vand.u32 2147483647, %v257_v49 }
  0x32   : > { %597 = vpow2.f32 %v533_v55  ;;  %v270_v12 = vor.u32 1.1754944e-38, %v269_v4 }
  0x33   : > { %v594_v60 = vpop.eup %593  ;;  %v372_v61 = vadd.f32 %v371_v58, %v368_v59  ;;  %vm268_vm3 = vcmp.eq.f32.partialorder %v267_v8, 8.507059e+37 }
  0x34   : > { %v296_v62 = vadd.f32 1.0, %v594_v60 }
  0x35   : > { %v540_v3 = vmul.f32 -1.442695, %v372_v61 }
  0x36   : > { %v596_v63 = vpop.eup %595  ;;  %599 = vrcp.f32 %v296_v62  ;;  %vm302_vm4 = vweird.f32 %v296_v62  ;;  %v306_v18 = vand.u32 2147483647, %v296_v62  ;;  %v308_v19 = vand.u32 2147483648, %v296_v62 }
  0x37   : > { %v259_v1 = vmul.f32 %v596_v63, %v257_v49  ;;  %vm264_vm1 = vweird.f32 %v596_v63  ;;  %601 = vpow2.f32 %v540_v3 }
  0x38   : > { %v598_v6 = vpop.eup %597  ;;  %vm265_vm2 = vmor %vm263_vm0, %vm264_vm1  ;;  %v309_v26 = vor.u32 1.1754944e-38, %v308_v19  ;;  %vm307_vm7 = vcmp.eq.f32.partialorder %v306_v18, 8.507059e+37 }
  0x39   : > { %v260_v7 = vsub.f32 1.0, %v259_v1  ;;  %v336_v9 = vadd.f32 1.0, %v598_v6 }
  0x3b   : > { %v261_v11 = vmul.f32 %v596_v63, %v260_v7  ;;  %603 = vrcp.f32 %v336_v9  ;;  %v348_v29 = vand.u32 2147483648, %v336_v9  ;;  %vm342_vm8 = vweird.f32 %v336_v9 }
  0x3c   : > { %v600_v13 = vpop.eup %599  ;;  %v346_v31 = vand.u32 2147483647, %v336_v9 }
  0x3d   : > { %v262_v14 = vadd.f32 %v596_v63, %v261_v11  ;;  %v298_v15 = vmul.f32 %v600_v13, %v296_v62  ;;  %v602_v16 = vpop.eup %601  ;;  %vm303_vm5 = vweird.f32 %v600_v13  ;;  %v349_v36 = vor.u32 1.1754944e-38, %v348_v29 }
  0x3e   : > { %v376_v22 = vadd.f32 1.0, %v602_v16  ;;  %vm304_vm6 = vmor %vm302_vm4, %vm303_vm5  ;;  %vm347_vm11 = vcmp.eq.f32.partialorder %v346_v31, 8.507059e+37 }
  0x3f   : > { %v266_v17 = vsel %vm265_vm2, %v596_v63, %v262_v14  ;;  %v299_v21 = vsub.f32 1.0, %v298_v15 }
  0x40   : > { %v271_v20 = vsel %vm268_vm3, %v270_v12, %v266_v17  ;;  %605 = vrcp.f32 %v376_v22  ;;  %vm382_vm12 = vweird.f32 %v376_v22  ;;  %v388_v39 = vand.u32 2147483648, %v376_v22 }
  0x41   : > { %v273_v23 = vmul.f32 %v271_v20, %v742_v0  ;;  %v604_v24 = vpop.eup %603  ;;  %v300_v25 = vmul.f32 %v600_v13, %v299_v21  ;;  %v386_v42 = vand.u32 2147483647, %v376_v22 }
  0x42   : > { %v338_v27 = vmul.f32 %v604_v24, %v336_v9  ;;  %vm343_vm9 = vweird.f32 %v604_v24 }
  0x43   : > { %274 = vst [vmem:[%s771_s30] sm:$0x3] %v273_v23  ;;  %v301_v28 = vadd.f32 %v600_v13, %v300_v25  ;;  %vm344_vm10 = vmor %vm342_vm8, %vm343_vm9  ;;  %vm387_vm15 = vcmp.eq.f32.partialorder %v386_v42, 8.507059e+37 }
  0x44   : > { %v339_v30 = vsub.f32 1.0, %v338_v27 }
  0x45   : > { %v305_v32 = vsel %vm304_vm6, %v600_v13, %v301_v28 }
  0x46   : > { %v310_v33 = vsel %vm307_vm7, %v309_v26, %v305_v32  ;;  %v340_v34 = vmul.f32 %v604_v24, %v339_v30  ;;  %v606_v35 = vpop.eup %605 }
  0x47   : > { %v312_v0 = vmul.f32 %v744_v2, %v310_v33  ;;  %v378_v38 = vmul.f32 %v606_v35, %v376_v22  ;;  %vm383_vm13 = vweird.f32 %v606_v35  ;;  %v389_v2 = vor.u32 1.1754944e-38, %v388_v39 }
  0x48   : > { %v341_v37 = vadd.f32 %v604_v24, %v340_v34  ;;  %vm384_vm14 = vmor %vm382_vm12, %vm383_vm13 }
  0x49   : > { %527 = vst [vmem:[%s771_s30 + $0x2] sm:$0x3] %v312_v0  ;;  %v379_v41 = vsub.f32 1.0, %v378_v38 }
  0x4a   : > { %v345_v40 = vsel %vm344_vm10, %v604_v24, %v341_v37 }
  0x4b   : > { %v350_v43 = vsel %vm347_vm11, %v349_v36, %v345_v40  ;;  %v380_v45 = vmul.f32 %v606_v35, %v379_v41 }
  0x4c   : > { %v352_v44 = vmul.f32 %v747_v5, %v350_v43 }
  0x4d   : > { %v381_v46 = vadd.f32 %v606_v35, %v380_v45 }
  0x4e   : > { %534 = vst [vmem:[%s771_s30 + $0x4] sm:$0x3] %v352_v44 }
  0x4f   : > { %v385_v47 = vsel %vm384_vm14, %v606_v35, %v381_v46 }
  0x50   : > { %v390_v48 = vsel %vm387_vm15, %v389_v2, %v385_v47 }
  0x51   : > { %v392_v49 = vmul.f32 %v750_v10, %v390_v48 }
  0x53   : > { %541 = vst [vmem:[%s771_s30 + $0x6] sm:$0x3] %v392_v49 }
  0x54 PF: > { %s15_s14 = sadd.s32 1, %s667_s14   ;;  %s795_s12 = smov %s663_s13 }
  0x55   : > { %p12_p8 = scmp.ge.s32.totalorder %s15_s14, 4   ;;  %s796_s13 = smov %s798_s16 }
  0x57   :  { %14 = sbr.rel (!%p12_p8) target bundleno = 3 (0x3), region = 77 }
  0x5c   :  { %422 = vsyncpa [#allocation3], 1 }
  0x5d   :  { %424 = vsyncpa [#allocation3 + $0x1], 1 }
  0x5e   :  { %425 = vsyncpa [#allocation5], 1 }

</bundles_post_ra>
